<compile_context>
chip_gen: v7x
topology: tpu7x:2x2x1
jax: 0.10.0
libtpu: 0.0.40
codegen_flags: <defaults>
</compile_context>

<pallas_src>
import functools

import jax
import jax.numpy as jnp
from jax import lax
from jax.experimental import pallas as pl
from jax.experimental.pallas import tpu as pltpu


def _round_up(x: int, m: int) -> int:
    return (x + m - 1) // m * m


# --------------------------------------------------------------------------- #
# Kernels
# --------------------------------------------------------------------------- #
def _resident_kernel(c2_ref, x_ref, cbT_ref, ids_ref):
    """Codebook fully VMEM-resident: one batch tile per step, full argmin."""
    x = x_ref[...]                                   # (TB, Dp)  native dtype
    cbT = cbT_ref[...]                               # (Dp, Np)  native dtype
    xc = jnp.dot(x, cbT, preferred_element_type=jnp.float32)   # (TB, Np) f32
    score = c2_ref[...] - xc                         # 0.5||c||^2 - x·c

    tb, n = score.shape
    row_min = jnp.min(score, axis=-1, keepdims=True)            # (TB, 1)
    col = lax.broadcasted_iota(jnp.int32, (tb, n), 1)
    # First minimal index (matches torch.min tie-breaking).
    winner = jnp.min(jnp.where(score == row_min, col, jnp.int32(n)),
                     axis=-1, keepdims=True)                    # (TB, 1) int32
    # Lane-dense store: broadcast across 128 lanes; wrapper reads column 0.
    ids_ref[...] = jnp.broadcast_to(winner, ids_ref.shape)


def _streaming_kernel(c2_ref, x_ref, cbT_ref, ids_ref,
                      best_score_ref, best_id_ref):
    """Streamed codebook: per-lane running argmin carry, XLU reduce at last j."""
    j = pl.program_id(1)
    nj = pl.num_programs(1)

    x = x_ref[...]                                   # (TB, Dp)
    cbT = cbT_ref[...]                               # (Dp, TN)
    xc = jnp.dot(x, cbT, preferred_element_type=jnp.float32)   # (TB, TN) f32
    score = c2_ref[...] - xc                         # (TB, TN)

    tb, tn = score.shape
    col = lax.broadcasted_iota(jnp.int32, (tb, tn), 1) + j * tn  # global ids

    @pl.when(j == 0)
    def _():
        best_score_ref[...] = score
        best_id_ref[...] = col

    @pl.when(j > 0)
    def _():
        # Strict '<' keeps the earliest codebook tile's id on exact ties
        # (pure VPU compare/select; no cross-lane work per step).
        better = score < best_score_ref[...]
        best_id_ref[...] = jnp.where(better, col, best_id_ref[...])
        best_score_ref[...] = jnp.where(better, score, best_score_ref[...])

    @pl.when(j == nj - 1)
    def _():
        bs = best_score_ref[...]
        bi = best_id_ref[...]
        row_min = jnp.min(bs, axis=-1, keepdims=True)            # (TB, 1)
        big = jnp.int32(jnp.iinfo(jnp.int32).max)
        winner = jnp.min(jnp.where(bs == row_min, bi, big),
                         axis=-1, keepdims=True)                 # (TB, 1)
        ids_ref[...] = jnp.broadcast_to(winner, ids_ref.shape)


# --------------------------------------------------------------------------- #
# Tiling plan
# --------------------------------------------------------------------------- #
_RESIDENT_CB_BUDGET = 10 << 20   # codebook bytes allowed to pin in VMEM
_VMEM_BUDGET = 32 << 20          # working-set budget (safe on v5e/v6e/v7x)


def _plan_tiles(B, N, D, itemsize, *, force_streaming=False, stream_tn=512):
    sub = {1: 32, 2: 16, 4: 8}[itemsize]   # sublane multiple for matmul dtype
    D_pad = _round_up(D, 128)
    N128 = _round_up(N, 128)
    cb_bytes = N128 * D_pad * itemsize

    if cb_bytes <= _RESIDENT_CB_BUDGET and not force_streaming:
        def est(tb):
            return (cb_bytes                      # resident codebook
                    + 2 * tb * D_pad * itemsize   # x (double-buffered)
                    + 2 * tb * N128 * 4           # score / argmin temporaries
                    + 2 * N128 * 4                # c2
                    + 2 * tb * 128 * 4)           # ids out (double-buffered)

        TB = min(512, _round_up(B, sub))
        while TB > sub and est(TB) > _VMEM_BUDGET:
            TB = max(sub, _round_up(TB // 2, sub))
        # v7x: give both TensorCores a batch tile when B allows it (codebook is
        # resident, so the extra tile costs no extra HBM traffic).
        if _round_up(B, TB) // TB < 2 and B >= 2 * sub:
            TB = max(sub, _round_up(-(-B // 2), sub))
        return dict(resident=True, TB=TB, TN=N128, D_pad=D_pad, N_pad=N128,
                    vmem=est(TB))

    # Streaming plan: TB is the arithmetic-intensity lever (codebook HBM reads
    # scale as 1/TB); shrink TN/TB only as needed to fit the VMEM budget.
    def est(tb, tn):
        return (2 * tb * D_pad * itemsize         # x
                + 2 * D_pad * tn * itemsize       # codebook tile (streamed)
                + 4 * tb * tn * 4                 # carry scratch + score temp
                + 2 * tn * 4                      # c2
                + 2 * tb * 128 * 4)               # ids out

    TB = min(512, _round_up(B, sub))
    TN = max(128, _round_up(min(stream_tn, N128), 128))
    while est(TB, TN) > _VMEM_BUDGET and (TN > 128 or TB > sub):
        if TN > 128:
            TN //= 2
        else:
            TB = max(sub, _round_up(TB // 2, sub))
    N_pad = _round_up(N, TN)
    return dict(resident=False, TB=TB, TN=TN, D_pad=D_pad, N_pad=N_pad,
                vmem=est(TB, TN))


# --------------------------------------------------------------------------- #
# Wrapper
# --------------------------------------------------------------------------- #
def quantize_forward(x, codebook, *, matmul_dtype=None,
                     force_streaming=False, stream_tn=512):
    """Eval-mode Quantize.forward: returns (approx_embeddings, ids, origin_embeddings).

    matmul_dtype: optional narrower dtype (e.g. jnp.bfloat16) for the distance
    matmul operands; halves codebook DMA bytes, f32 accumulation is kept. May
    flip ids on exact near-ties vs. the f32 reference, so it is opt-in.
    """
    B, D = x.shape
    N, Dc = codebook.shape
    assert D == Dc

    mm_dtype = jnp.dtype(matmul_dtype) if matmul_dtype is not None else x.dtype
    itemsize = mm_dtype.itemsize
    plan = _plan_tiles(B, N, D, itemsize,
                       force_streaming=force_streaming, stream_tn=stream_tn)
    TB, TN = plan["TB"], plan["TN"]
    D_pad, N_pad = plan["D_pad"], plan["N_pad"]
    B_pad = _round_up(B, TB)

    # TODO(synk): if the codebook is reused across calls, cache the padded /
    # transposed codebook and c2 instead of recomputing them per call.
    x_p = jnp.pad(x.astype(mm_dtype), ((0, B_pad - B), (0, D_pad - D)))
    cb_p = jnp.pad(codebook.astype(mm_dtype), ((0, N_pad - N), (0, D_pad - D)))
    cbT_p = cb_p.T                       # (D_pad, N_pad) one-time transpose
    # Hoisted 0.5*||c||^2 (argmin-invariant); padded codes get +inf so they
    # can never win the argmin.
    c2 = 0.5 * jnp.sum(codebook.astype(jnp.float32) ** 2, axis=-1)
    c2_p = jnp.concatenate(
        [c2, jnp.full((N_pad - N,), jnp.inf, jnp.float32)])[None, :]  # (1, N_pad)

    vmem_limit = int(min(max(plan["vmem"] + (8 << 20), 32 << 20), 48 << 20))

    if plan["resident"]:
        compiler_params = pltpu.CompilerParams(
            dimension_semantics=("parallel",),
            vmem_limit_bytes=vmem_limit)
        ids_padded = pl.pallas_call(
            _resident_kernel,
            out_shape=jax.ShapeDtypeStruct((B_pad, 128), jnp.int32),
            grid_spec=pltpu.PrefetchScalarGridSpec(
                num_scalar_prefetch=0,
                grid=(B_pad // TB,),
                in_specs=[
                    pl.BlockSpec((1, N_pad), lambda i: (0, 0)),      # c2 (resident)
                    pl.BlockSpec((TB, D_pad), lambda i: (i, 0)),     # x tile
                    pl.BlockSpec((D_pad, N_pad), lambda i: (0, 0)),  # codebook (resident)
                ],
                out_specs=pl.BlockSpec((TB, 128), lambda i: (i, 0)),
            ),
            compiler_params=compiler_params,
        )(c2_p, x_p, cbT_p)
    else:
        compiler_params = pltpu.CompilerParams(
            dimension_semantics=("parallel", "arbitrary"),
            vmem_limit_bytes=vmem_limit)
        ids_padded = pl.pallas_call(
            _streaming_kernel,
            out_shape=jax.ShapeDtypeStruct((B_pad, 128), jnp.int32),
            grid_spec=pltpu.PrefetchScalarGridSpec(
                num_scalar_prefetch=0,
                grid=(B_pad // TB, N_pad // TN),
                in_specs=[
                    pl.BlockSpec((1, TN), lambda i, j: (0, j)),       # c2 tile
                    pl.BlockSpec((TB, D_pad), lambda i, j: (i, 0)),   # x tile
                    pl.BlockSpec((D_pad, TN), lambda i, j: (0, j)),   # codebook tile
                ],
                out_specs=pl.BlockSpec((TB, 128), lambda i, j: (i, 0)),
                scratch_shapes=[
                    pltpu.VMEM((TB, TN), jnp.float32),  # per-lane best score
                    pltpu.VMEM((TB, TN), jnp.int32),    # per-lane best global id
                ],
            ),
            compiler_params=compiler_params,
        )(c2_p, x_p, cbT_p)

    ids = ids_padded[:B, 0]
    ids = jnp.minimum(ids, N - 1)  # guard only; padded codes can never win (+inf c2)
    # Exact gather of the winning codebook rows (out_proj == Identity).
    emb = jnp.take(codebook, ids, axis=0)
    # In eval mode approx_embeddings == origin_embeddings == codebook[ids].
    return emb, ids, emb


def reference_forward(x, codebook):
    dist = (
        jnp.sum(x ** 2, axis=1, keepdims=True)
        + jnp.sum(codebook.T ** 2, axis=0, keepdims=True)
        - 2.0 * x @ codebook.T
    )
    ids = jnp.argmin(dist, axis=1)
    emb = codebook[ids]
    return emb, ids, emb


if __name__ == "__main__":
    key = jax.random.PRNGKey(0)
    kx, kw, kx2, kw2 = jax.random.split(key, 4)

    # ------- test 1: resident fast path (small codebook) -------------------
    embed_dim, n_embed, batch = 32, 64, 8
    # nn.Embedding weight initialized with uniform_() in _init_weights -> U[0, 1)
    codebook = jax.random.uniform(kw, (n_embed, embed_dim), dtype=jnp.float32)
    x = jax.random.normal(kx, (batch, embed_dim), dtype=jnp.float32)
    temperature = 1.0  # unused in the deterministic (eval) path

    app_emb, ids, org_emb = quantize_forward(x, codebook)
    jax.block_until_ready((app_emb, ids, org_emb))

    ref_emb, ref_ids, _ = reference_forward(x, codebook)
    assert jnp.all(ids == ref_ids), "ids mismatch (resident path)"
    assert jnp.allclose(app_emb, ref_emb, atol=1e-5), "embedding mismatch (resident)"
    assert jnp.allclose(org_emb, ref_emb, atol=1e-5), "origin mismatch (resident)"

    # ------- test 2: streaming path (forced, multiple codebook tiles) ------
    embed_dim2, n_embed2, batch2 = 32, 384, 24
    codebook2 = jax.random.uniform(kw2, (n_embed2, embed_dim2), dtype=jnp.float32)
    x2 = jax.random.normal(kx2, (batch2, embed_dim2), dtype=jnp.float32)

    app2, ids2, org2 = quantize_forward(
        x2, codebook2, force_streaming=True, stream_tn=128)
    jax.block_until_ready((app2, ids2, org2))

    ref2, rid2, _ = reference_forward(x2, codebook2)
    assert jnp.all(ids2 == rid2), "ids mismatch (streaming path)"
    assert jnp.allclose(app2, ref2, atol=1e-5), "embedding mismatch (streaming)"

    print("KERNEL_OK")
</pallas_src>

<mosaic_0001>
module attributes {stable_mosaic.version = 11 : i64} {
  func.func @_resident_kernel(%arg0: i32, %arg1: memref<1x128xf32, #tpu.memory_space<vmem>>, %arg2: memref<8x128xf32, #tpu.memory_space<vmem>>, %arg3: memref<128x128xf32, #tpu.memory_space<vmem>>, %arg4: memref<8x128xi32, #tpu.memory_space<vmem>>) attributes {dimension_semantics = [#tpu.dimension_semantics<parallel>], iteration_bounds = array<i64: 1>, scalar_prefetch = 0 : i64, scratch_operands = 0 : i64, tpu.core_type = #tpu.core_type<tc>, window_params = [{pipeline_mode = #tpu.pipeline_mode<synchronous>, transform_indices = @transform_0, window_bounds = array<i64: 1, 128>}, {transform_indices = @transform_1, window_bounds = array<i64: 8, 128>}, {pipeline_mode = #tpu.pipeline_mode<synchronous>, transform_indices = @transform_2, window_bounds = array<i64: 128, 128>}, {transform_indices = @transform_3, window_bounds = array<i64: 8, 128>}]} {
    %c0 = arith.constant 0 : index
    %c0_0 = arith.constant 0 : index
    %0 = vector.load %arg2[%c0, %c0_0] : memref<8x128xf32, #tpu.memory_space<vmem>>, vector<8x128xf32>
    %c0_1 = arith.constant 0 : index
    %c0_2 = arith.constant 0 : index
    %1 = vector.load %arg3[%c0_1, %c0_2] : memref<128x128xf32, #tpu.memory_space<vmem>>, vector<128x128xf32>
    %cst = arith.constant dense<0.000000e+00> : vector<8x128xf32>
    %2 = tpu.matmul %0, %1, %cst {dimension_numbers = #tpu.dot_dimension_numbers<[1], [0], [0], [1], [0, 0, 1, 1], [], []>} : vector<8x128xf32>, vector<128x128xf32>, vector<8x128xf32> -> vector<8x128xf32>
    %c0_3 = arith.constant 0 : index
    %c0_4 = arith.constant 0 : index
    %3 = vector.load %arg1[%c0_3, %c0_4] : memref<1x128xf32, #tpu.memory_space<vmem>>, vector<1x128xf32>
    %4 = vector.broadcast %3 : vector<1x128xf32> to vector<8x128xf32>
    %5 = arith.subf %4, %2 : vector<8x128xf32>
    %cst_5 = arith.constant dense<0x7F800000> : vector<8xf32>
    %6 = vector.multi_reduction <minimumf>, %5, %cst_5 [1] : vector<8x128xf32> to vector<8xf32>
    %7 = vector.shape_cast %6 : vector<8xf32> to vector<8x1xf32>
    %8 = tpu.iota {dimensions = array<i32: 1>} : vector<8x128xi32>
    %9 = vector.broadcast %7 : vector<8x1xf32> to vector<8x128xf32>
    %10 = arith.cmpf oeq, %5, %9 : vector<8x128xf32>
    %c128_i32 = arith.constant 128 : i32
    %11 = vector.broadcast %c128_i32 : i32 to vector<8x128xi32>
    %12 = arith.select %10, %8, %11 : vector<8x128xi1>, vector<8x128xi32>
    %cst_6 = arith.constant dense<2147483647> : vector<8xi32>
    %13 = vector.multi_reduction <minsi>, %12, %cst_6 [1] : vector<8x128xi32> to vector<8xi32>
    %14 = vector.shape_cast %13 : vector<8xi32> to vector<8x1xi32>
    %15 = vector.shape_cast %14 : vector<8x1xi32> to vector<8x1xi32>
    %16 = vector.broadcast %15 : vector<8x1xi32> to vector<8x128xi32>
    %c0_7 = arith.constant 0 : index
    %c0_8 = arith.constant 0 : index
    %17 = vector.load %arg4[%c0_7, %c0_8] : memref<8x128xi32, #tpu.memory_space<vmem>>, vector<8x128xi32>
    tpu.vector_store %arg4[%c0_7, %c0_8], %16 {strides = array<i32>} : memref<8x128xi32, #tpu.memory_space<vmem>>, vector<8x128xi32>,
    return
  }
  func.func @transform_0(%arg0: i32) -> (i32, i32) {
    %c0_i32 = arith.constant 0 : i32
    %c0_i32_0 = arith.constant 0 : i32
    %c0_i32_1 = arith.constant 0 : i32
    return %c0_i32, %c0_i32_0 : i32, i32
  }
  func.func @transform_1(%arg0: i32) -> (i32, i32) {
    %c0_i32 = arith.constant 0 : i32
    %c0_i32_0 = arith.constant 0 : i32
    return %arg0, %c0_i32 : i32, i32
  }
  func.func @transform_2(%arg0: i32) -> (i32, i32) {
    %c0_i32 = arith.constant 0 : i32
    %c0_i32_0 = arith.constant 0 : i32
    %c0_i32_1 = arith.constant 0 : i32
    return %c0_i32, %c0_i32_0 : i32, i32
  }
  func.func @transform_3(%arg0: i32) -> (i32, i32) {
    %c0_i32 = arith.constant 0 : i32
    %c0_i32_0 = arith.constant 0 : i32
    return %arg0, %c0_i32 : i32, i32
  }
}

</mosaic_0001>

<bundles_post_ra>
// kernel: tpu_custom_call.1
= control target key start
LH: loop header
LB: loop body
LE: loop exit
PB: predicated region body
PF: predicated region fallthrough
CT: control target
= control target key end

     0   :  { %8 = vsyncpa [#allocation3], 0  ;;  %s441_s0 = inlined_call_operand.hbm [shape: f32[1,128], index: 0, kind: input, shape index: {}]   ;;  %s442_s1 = inlined_call_operand.hbm [shape: f32[8,128], index: 1, kind: input, shape index: {}]   ;;  %s443_s2 = inlined_call_operand.hbm [shape: f32[128,128], index: 2, kind: input, shape index: {}]   ;;  %s444_s3 = inlined_call_operand.hbm [shape: s32[8,128], index: 3, kind: output, shape index: {}]  }
   0x1   :  { %9 = vsyncpa [#allocation6], 0 }
   0x2   :  { %10 = vsyncpa [#allocation4], 0  ;;  %s364_s12 = smov [#allocation5]   ;;  %s365_s14 = smov [#allocation2]  }
   0x3   :  { %s27_s13 = sshll.u32 %s364_s12, 4  ;;  %s17_s15 = sshll.u32 %s365_s14, 4  ;;  %s28_s13 = int_to_ptr.vmem [resolvable:$true] %s27_s13  ;;  %s18_s15 = int_to_ptr.vmem [resolvable:$true] %s17_s15 }
   0x4   :  { %s270_s18 = scalar_lea.hbm %s442_s1, 128 }
   0x5   :  { %p271_p0 = scmp.ne.s32.totalorder %s442_s1, %s270_s18  ;;  %p274_p1 = scmp.lt.u32.totalorder %s270_s18, %s442_s1 }
   0x7   :  { %p276_p2 = pnand %p274_p1, %p271_p0 }
   0x9   :  { %279 = shalt.err (!%p276_p2)
}
   0xa   :  { %s280_s23 = scalar_lea.vmem %s28_s13, 128  ;;  %p285_p4 = scmp.lt.s32.totalorder %s28_s13, %s28_s13 }
   0xb   :  { %p281_p3 = scmp.ne.s32.totalorder %s28_s13, %s280_s23  ;;  %p286_p5 = scmp.lt.s32.totalorder %s280_s23, %s280_s23 }
   0xd   :  { %p287_p6 = por %p286_p5, %p285_p4 }
   0xf   :  { %p288_p7 = pnand %p287_p6, %p281_p3 }
  0x11   :  { %291 = shalt.err (!%p288_p7)
}
  0x12   :  { %30 = dma.hbm_to_vmem [thread:$0]  %s442_s1, 128, %s28_s13, [#allocation6]  }
  0x13   :  { %s292_s28 = scalar_lea.hbm %s441_s0, 16 }
  0x14   :  { %p293_p8 = scmp.ne.s32.totalorder %s441_s0, %s292_s28  ;;  %p296_p9 = scmp.lt.u32.totalorder %s292_s28, %s441_s0 }
  0x16   :  { %p298_p10 = pnand %p296_p9, %p293_p8 }
  0x18   :  { %301 = shalt.err (!%p298_p10)
}
  0x19   :  { %s302_s6 = scalar_lea.vmem %s18_s15, 16  ;;  %s306_s7 = scalar_lea.vmem %s18_s15, 32 }
  0x1a   :  { %p303_p11 = scmp.ne.s32.totalorder %s18_s15, %s302_s6  ;;  %p307_p12 = scmp.lt.s32.totalorder %s18_s15, %s18_s15 }
  0x1b   :  { %p308_p13 = scmp.lt.s32.totalorder %s306_s7, %s302_s6 }
  0x1d   :  { %p309_p0 = por %p308_p13, %p307_p12 }
  0x1f   :  { %p310_p1 = pnand %p309_p0, %p303_p11 }
  0x21   :  { %313 = shalt.err (!%p310_p1)
}
  0x22   :  { %20 = dma.hbm_to_vmem [thread:$0]  %s441_s0, 16, %s18_s15, [#allocation3]  }
  0x23   :  { %s366_s9 = smov [#allocation7]   ;;  %s314_s13 = scalar_lea.hbm %s443_s2, 2048 }
  0x24   :  { %s36_s10 = sshll.u32 %s366_s9, 4  ;;  %p315_p2 = scmp.ne.s32.totalorder %s443_s2, %s314_s13  ;;  %s37_s10 = int_to_ptr.vmem [resolvable:$true] %s36_s10 }
  0x25   :  { %p318_p3 = scmp.lt.u32.totalorder %s314_s13, %s443_s2 }
  0x27   :  { %p320_p4 = pnand %p318_p3, %p315_p2 }
  0x29   :  { %323 = shalt.err (!%p320_p4)
}
  0x2a   :  { %s324_s19 = scalar_lea.vmem %s37_s10, 2048  ;;  %p329_p6 = scmp.lt.s32.totalorder %s37_s10, %s37_s10 }
  0x2b   :  { %p325_p5 = scmp.ne.s32.totalorder %s37_s10, %s324_s19  ;;  %p330_p7 = scmp.lt.s32.totalorder %s324_s19, %s324_s19 }
  0x2d   :  { %p331_p8 = por %p330_p7, %p329_p6 }
  0x2f   :  { %p332_p9 = pnand %p331_p8, %p325_p5 }
  0x31   :  { %335 = shalt.err (!%p332_p9)
}
  0x32   :  { %s367_s0 = smov 128   ;;  %s368_s15 = smov 8  }
  0x33   :  { %42 = dma.hbm_to_vmem [thread:$0]  %s443_s2, 2048, %s37_s10, [#allocation6], %s367_s0, %s367_s0, %s368_s15  }
  0x34   :  { %358 = dma.done.wait [#allocation3], 16  }
  0x35   :  { %359 = vsyncadd [#allocation3], 4294967280 }
  0x36   :  { %360 = dma.done.wait [#allocation6], 2176  }
  0x37   :  { %361 = vsyncadd [#allocation6], 4294965120  ;;  %v369_v0 = vmov 0.0|0.0   ;;  %vm370_vm0 = vmmov 0   ;;  %v371_v1 = vmov 0.0   ;;  %v53_v2 = vld [vmem:[#allocation7] sm:$0xff]  ;;  %v149_v31 = vlaneseq }
  0x38   :  { %237 = vmatprep.subr.bf16.mxu0 %v369_v0  ;;  %234 = vmatprep.mubr.msk.f32.mxu0 %vm370_vm0, %v371_v1  ;;  %v54_v3 = vld [vmem:[#allocation7 + $0x8] sm:$0xff]  ;;  %v55_v4 = vld [vmem:[#allocation7 + $0x10] sm:$0xff]  ;;  %v56_v6 = vld [vmem:[#allocation7 + $0x18] sm:$0xff]  ;;  %s372_s2 = smov [#allocation8]  }
  0x39   :  { %v238_v5 = vpack.c.bf16 %v54_v3, %v53_v2  ;;  %v241_v7 = vpack.c.bf16 %v56_v6, %v55_v4  ;;  %v57_v8 = vld [vmem:[#allocation7 + $0x20] sm:$0xff]  ;;  %v58_v9 = vld [vmem:[#allocation7 + $0x28] sm:$0xff]  ;;  %v59_v11 = vld [vmem:[#allocation7 + $0x30] sm:$0xff]  ;;  %v150_v32 = vand.u32 127, %v149_v31  ;;  %s174_s22 = sshll.u32 %s372_s2, 4  ;;  %s175_s22 = int_to_ptr.vmem [resolvable:$true] %s174_s22 }
  0x3a   :  { %v244_v10 = vpack.c.bf16 %v58_v9, %v57_v8  ;;  %v60_v12 = vld [vmem:[#allocation7 + $0x38] sm:$0xff]  ;;  %v61_v14 = vld [vmem:[#allocation7 + $0x40] sm:$0xff]  ;;  %v62_v15 = vld [vmem:[#allocation7 + $0x48] sm:$0xff]  ;;  %s336_s23 = scalar_lea.vmem %s175_s22, 128  ;;  %p341_p11 = scmp.lt.s32.totalorder %s175_s22, %s175_s22 }
  0x3b   :  { %239 = vmatpush3.bf16.msra.mxu0 %v238_v5  ;;  %v247_v13 = vpack.c.bf16 %v60_v12, %v59_v11  ;;  %v250_v16 = vpack.c.bf16 %v62_v15, %v61_v14  ;;  %v63_v17 = vld [vmem:[#allocation7 + $0x50] sm:$0xff]  ;;  %v64_v18 = vld [vmem:[#allocation7 + $0x58] sm:$0xff]  ;;  %v65_v20 = vld [vmem:[#allocation7 + $0x60] sm:$0xff]  ;;  %p337_p10 = scmp.ne.s32.totalorder %s175_s22, %s336_s23  ;;  %p342_p12 = scmp.lt.s32.totalorder %s336_s23, %s336_s23 }
  0x3c   :  { %240 = vmatprep.subr.bf16.mxu0 %v369_v0  ;;  %v253_v19 = vpack.c.bf16 %v64_v18, %v63_v17  ;;  %v66_v21 = vld [vmem:[#allocation7 + $0x68] sm:$0xff]  ;;  %v67_v23 = vld [vmem:[#allocation7 + $0x70] sm:$0xff]  ;;  %v68_v24 = vld [vmem:[#allocation7 + $0x78] sm:$0xff] }
  0x3d   :  { %v256_v22 = vpack.c.bf16 %v66_v21, %v65_v20  ;;  %v259_v25 = vpack.c.bf16 %v68_v24, %v67_v23  ;;  %v52_v26 = vld [vmem:[#allocation5] sm:$0xff]  ;;  %v184_v27 = vld [vmem:[#allocation2] ss:$0 sm:$0xff]  ;;  %p343_p13 = por %p342_p12, %p341_p11 }
  0x3f   :  { %242 = vmatpush3.bf16.msra.mxu0 %v241_v7  ;;  %p344_p0 = pnand %p343_p13, %p337_p10 }
  0x40   :  { %243 = vmatprep.subr.bf16.mxu0 %v369_v0 }
  0x43   :  { %245 = vmatpush3.bf16.msra.mxu0 %v244_v10 }
  0x44   :  { %246 = vmatprep.subr.bf16.mxu0 %v369_v0 }
  0x47   :  { %248 = vmatpush3.bf16.msra.mxu0 %v247_v13 }
  0x48   :  { %249 = vmatprep.subr.bf16.mxu0 %v369_v0 }
  0x4b   :  { %251 = vmatpush3.bf16.msra.mxu0 %v250_v16 }
  0x4c   :  { %252 = vmatprep.subr.bf16.mxu0 %v369_v0 }
  0x4f   :  { %254 = vmatpush3.bf16.msra.mxu0 %v253_v19 }
  0x50   :  { %255 = vmatprep.subr.bf16.mxu0 %v369_v0 }
  0x53   :  { %257 = vmatpush3.bf16.msra.mxu0 %v256_v22 }
  0x54   :  { %258 = vmatprep.subr.bf16.mxu0 %v369_v0 }
  0x57   :  { %260 = vmatpush3.bf16.msra.mxu0 %v259_v25 }
  0x5a   :  { %235 = vmatmul.mubr.f32.vlgmr.msra.gmra.mrb[0].mxu0 %v52_v26 }
 0x12d   :  { %v135_v28 = vpop.f32.mrb[0].mxu0 }
 0x12e   :  { %v146_v29 = vsub.f32 %v184_v27, %v135_v28  ;;  %v236_v30 = vpop.f32.mrb[1].mxu0 }
 0x130   :  { %147 = vmin.xlane.f32.xlu0 %v146_v29 }
 0x1bd   :  { %v148_v33 = vpop.xlane.xlu0 %147 }
 0x1be   :  { %vm151_vm1 = vcmp.eq.f32.partialorder %v146_v29, %v148_v33 }
 0x1bf   :  { %v152_v34 = vsel %vm151_vm1, %v150_v32, 128 }
 0x1c0   :  { %v154_v35 = vshra.s32 %v152_v34, 16  ;;  %v153_v37 = vand.u32 65535, %v152_v34 }
 0x1c2   :  { %v156_v36 = vcvt.s32.f32 %v154_v35  ;;  %v155_v39 = vcvt.s32.f32 %v153_v37 }
 0x1c4   :  { %157 = vmin.xlane.f32.xlu0 %v156_v36 }
 0x251   :  { %v158_v38 = vpop.xlane.xlu0 %157 }
 0x252   :  { %vm159_vm2 = vcmp.eq.f32.partialorder %v156_v36, %v158_v38  ;;  %v164_v41 = vcvt.f32.s32 %v158_v38 }
 0x253   :  { %v160_v40 = vsel %vm159_vm2, %v155_v39, inf }
 0x254   :  { %161 = vmin.xlane.f32.xlu1 %v160_v40  ;;  %v165_v43 = vshll.u32 %v164_v41, 16 }
 0x2e1   :  { %v162_v42 = vpop.xlane.xlu1 %161 }
 0x2e2   :  { %v163_v44 = vcvt.f32.s32 %v162_v42 }
 0x2e4   :  { %v166_v45 = vadd.s32 %v165_v43, %v163_v44 }
 0x2e6   :  { %167 = vst [vmem:[#allocation8] sm:$0xff] %v166_v45 }
 0x2e7   :  { %347 = shalt.err (!%p344_p0)
}
 0x2e8   :  { %s348_s26 = scalar_lea.hbm %s444_s3, 128 }
 0x2e9   :  { %p349_p1 = scmp.ne.s32.totalorder %s444_s3, %s348_s26  ;;  %p352_p2 = scmp.lt.u32.totalorder %s348_s26, %s444_s3 }
 0x2eb   :  { %p354_p3 = pnand %p352_p2, %p349_p1 }
 0x2ed   :  { %357 = shalt.err (!%p354_p3)
}
 0x2ee   :  { %177 = dma.vmem_to_hbm [thread:$0]  %s175_s22, 128, %s444_s3, [#allocation4]  }
 0x2ef   :  { %362 = dma.done.wait [#allocation4], 128  }
 0x2f0   :  { %363 = vsyncadd [#allocation4], 4294967168 }
 0x2f1   :  { %181 = vsyncpa [#allocation3], 1 }
 0x2f2   :  { %182 = vsyncpa [#allocation6], 1 }
 0x2f3   :  { %183 = vsyncpa [#allocation4], 1 }

</bundles_post_ra>
